<compile_context>
chip_gen: v5e
topology: v5e:2x2
jax: 0.10.0
libtpu: 0.0.40
codegen_flags: <defaults>
</compile_context>

<pallas_src>
import jax
import jax.numpy as jnp
from jax.experimental import pallas as pl
from jax.experimental.pallas import tpu as pltpu


def _deconv_gemm_kernel(w_ref, b_ref, p_ref, y_ref):
    # w: [4*C_out, 4*C_in]  (VMEM-resident), p: [4*C_in, TILE_M], b: [4*C_out, 1]
    acc = jnp.dot(w_ref[...], p_ref[...], preferred_element_type=jnp.float32)
    y_ref[...] = (acc + b_ref[...]).astype(y_ref.dtype)


def _bn_prelu_kernel(y_ref, scale_ref, shift_ref, alpha_ref, o_ref):
    # Fused BatchNorm affine (scale/shift precomputed from batch stats) + PReLU.
    z = y_ref[...] * scale_ref[...] + shift_ref[...]
    o_ref[...] = (jnp.maximum(z, 0.0) + alpha_ref[...] * jnp.minimum(z, 0.0)).astype(o_ref.dtype)


def upblock_forward(x, weight, bias, gamma, beta, alpha, *, eps=1e-5, tile_m=256):
    """Upblock forward.

    x:      [N, C_in, H, W]        (NCHW, float32)
    weight: [C_in, C_out, 3, 3]    (PyTorch ConvTranspose2d layout)
    bias:   [C_out]
    gamma, beta: [C_out]           (BatchNorm2d affine params)
    alpha:  scalar                 (PReLU single parameter)
    returns [N, C_out, 2H, 2W]
    """
    N, C_in, H, W = x.shape
    C_out = weight.shape[1]
    Ho, Wo = 2 * H, 2 * W
    M = N * H * W
    KP = 4 * C_in      # 4 shifted copies of the input channels
    CP = 4 * C_out     # 4 output sub-pixel phases x C_out

    f32 = jnp.float32
    x = x.astype(f32)

    # ---- glue: 4 shifted copies of x (zero past the bottom/right edge) ----
    def shifted(di, dj):
        xp = jnp.pad(x, ((0, 0), (0, 0), (0, di), (0, dj)))
        return xp[:, :, di:di + H, dj:dj + W]          # value x[i+di, j+dj], 0 if out of range

    groups = [shifted(0, 0), shifted(0, 1), shifted(1, 0), shifted(1, 1)]
    # P^T: [4*C_in, M], row = g*C_in + c, col = n*H*W + i*W + j
    p_t = jnp.stack(groups, axis=1).transpose(1, 2, 0, 3, 4).reshape(KP, M)

    # ---- glue: phase-decomposed transposed-conv weight -> [4*C_out, 4*C_in] ----
    wt = weight.astype(f32)                            # [C_in, C_out, 3, 3]
    Z = jnp.zeros((C_in, C_out), f32)
    t = lambda ky, kx: wt[:, :, ky, kx]
    # blocks[phase][group]: coefficient of shifted copy `group` for output phase `phase`
    # phases: (even,even), (even,odd), (odd,even), (odd,odd) of the 2x-upsampled output
    blocks = [
        [t(1, 1), Z,        Z,        Z       ],
        [t(1, 2), t(1, 0),  Z,        Z       ],
        [t(2, 1), Z,        t(0, 1),  Z       ],
        [t(2, 2), t(2, 0),  t(0, 2),  t(0, 0)],
    ]
    w_big = jnp.concatenate(
        [jnp.concatenate([blocks[p][g] for p in range(4)], axis=1) for g in range(4)],
        axis=0)                                        # [4*C_in, 4*C_out]
    w_t = w_big.T                                      # [4*C_out, 4*C_in]
    b_col = jnp.tile(bias.astype(f32), 4).reshape(CP, 1)

    # ---- pad M up to a multiple of the tile ----
    num_tiles = pl.cdiv(M, tile_m)
    M_pad = num_tiles * tile_m
    if M_pad != M:
        p_t = jnp.pad(p_t, ((0, 0), (0, M_pad - M)))

    cparams = pltpu.CompilerParams(
        dimension_semantics=("parallel",),             # independent M tiles (v7x: 2 TCs)
        vmem_limit_bytes=32 * 1024 * 1024,
    )

    # ---- Pallas pass 1: transposed-conv GEMM + bias,  y^T = W_big^T @ P^T + b ----
    y_t = pl.pallas_call(
        _deconv_gemm_kernel,
        out_shape=jax.ShapeDtypeStruct((CP, M_pad), f32),
        grid=(num_tiles,),
        in_specs=[
            pl.BlockSpec((CP, KP), lambda i: (0, 0)),       # weights: resident
            pl.BlockSpec((CP, 1), lambda i: (0, 0)),        # bias: resident
            pl.BlockSpec((KP, tile_m), lambda i: (0, i)),   # patches: pipelined over M
        ],
        out_specs=pl.BlockSpec((CP, tile_m), lambda i: (0, i)),  # lane dim = tile_m (dense)
        compiler_params=cparams,
        cost_estimate=pl.CostEstimate(
            flops=2 * CP * KP * M_pad,
            transcendentals=0,
            bytes_accessed=4 * (CP * KP + KP * M_pad + CP * M_pad + CP)),
    )(w_t, b_col, p_t)

    # ---- glue: BatchNorm2d training-mode batch statistics (global reduce over N,Ho,Wo) ----
    y_valid = y_t[:, :M].reshape(4, C_out, M)
    mean = y_valid.mean(axis=(0, 2))
    var = ((y_valid - mean[None, :, None]) ** 2).mean(axis=(0, 2))   # biased var (PyTorch BN)
    scale_c = gamma.astype(f32) / jnp.sqrt(var + eps)
    shift_c = beta.astype(f32) - mean * scale_c
    scale_col = jnp.tile(scale_c, 4).reshape(CP, 1)
    shift_col = jnp.tile(shift_c, 4).reshape(CP, 1)
    alpha_col = jnp.full((CP, 1), alpha, dtype=f32)

    # ---- Pallas pass 2: fused BN affine + PReLU (lane-dense elementwise, tiled over M) ----
    y_act = pl.pallas_call(
        _bn_prelu_kernel,
        out_shape=jax.ShapeDtypeStruct((CP, M_pad), f32),
        grid=(num_tiles,),
        in_specs=[
            pl.BlockSpec((CP, tile_m), lambda i: (0, i)),
            pl.BlockSpec((CP, 1), lambda i: (0, 0)),
            pl.BlockSpec((CP, 1), lambda i: (0, 0)),
            pl.BlockSpec((CP, 1), lambda i: (0, 0)),
        ],
        out_specs=pl.BlockSpec((CP, tile_m), lambda i: (0, i)),
        compiler_params=cparams,
    )(y_t, scale_col, shift_col, alpha_col)

    # ---- glue: un-scatter sub-pixel phases -> NCHW [N, C_out, 2H, 2W] ----
    out = y_act[:, :M].reshape(2, 2, C_out, N, H, W)          # (ph, pw, o, n, i, j)
    out = out.transpose(3, 2, 4, 0, 5, 1).reshape(N, C_out, Ho, Wo)
    return out


if __name__ == "__main__":
    # Small shapes consistent with the module: batch=2, C_in=4, C_out=8, H=W=16
    N, C_in, C_out, H, W = 2, 4, 8, 16, 16

    key = jax.random.PRNGKey(0)
    kx, kw, kb, kg, kbe = jax.random.split(key, 5)

    x = jax.random.normal(kx, (N, C_in, H, W), dtype=jnp.float32)

    # ConvTranspose2d default init (Kaiming-uniform-like bound); weight is [C_in, C_out, 3, 3]
    fan_in = C_out * 3 * 3
    bound = 1.0 / jnp.sqrt(fan_in)
    weight = jax.random.uniform(kw, (C_in, C_out, 3, 3),
                                minval=-bound, maxval=bound, dtype=jnp.float32)
    bias = jax.random.uniform(kb, (C_out,),
                              minval=-bound, maxval=bound, dtype=jnp.float32)
    gamma = jax.random.uniform(kg, (C_out,), minval=0.5, maxval=1.5, dtype=jnp.float32)
    beta = jax.random.uniform(kbe, (C_out,), minval=-0.5, maxval=0.5, dtype=jnp.float32)
    alpha = 0.25   # nn.PReLU() default init

    out = upblock_forward(x, weight, bias, gamma, beta, alpha)
    out = jax.block_until_ready(out)
    assert out.shape == (N, C_out, 2 * H, 2 * W)

    # ---- reference: XLA transposed conv (lhs-dilated conv with flipped kernel) + BN + PReLU ----
    w_flip = jnp.flip(weight, axis=(2, 3)).transpose(1, 0, 2, 3)   # [C_out, C_in, 3, 3]
    conv = jax.lax.conv_general_dilated(
        x, w_flip, window_strides=(1, 1), padding=((1, 2), (1, 2)),
        lhs_dilation=(2, 2), dimension_numbers=("NCHW", "OIHW", "NCHW"),
    ) + bias.reshape(1, C_out, 1, 1)
    mu = conv.mean(axis=(0, 2, 3), keepdims=True)
    vr = ((conv - mu) ** 2).mean(axis=(0, 2, 3), keepdims=True)
    normed = (conv - mu) / jnp.sqrt(vr + 1e-5) * gamma.reshape(1, C_out, 1, 1) \
             + beta.reshape(1, C_out, 1, 1)
    ref = jnp.maximum(normed, 0.0) + alpha * jnp.minimum(normed, 0.0)

    assert jnp.allclose(out, ref, atol=2e-3, rtol=2e-3), \
        float(jnp.max(jnp.abs(out - ref)))

    print("KERNEL_OK")
</pallas_src>

<mosaic_0001>
module attributes {stable_mosaic.version = 11 : i64} {
  func.func @_deconv_gemm_kernel(%arg0: i32, %arg1: memref<32x16xf32, #tpu.memory_space<vmem>>, %arg2: memref<32x1xf32, #tpu.memory_space<vmem>>, %arg3: memref<16x256xf32, #tpu.memory_space<vmem>>, %arg4: memref<32x256xf32, #tpu.memory_space<vmem>>) attributes {dimension_semantics = [#tpu.dimension_semantics<parallel>], iteration_bounds = array<i64: 2>, scalar_prefetch = 0 : i64, scratch_operands = 0 : i64, tpu.core_type = #tpu.core_type<tc>, window_params = [{pipeline_mode = #tpu.pipeline_mode<synchronous>, transform_indices = @transform_0, window_bounds = array<i64: 32, 16>}, {pipeline_mode = #tpu.pipeline_mode<synchronous>, transform_indices = @transform_1, window_bounds = array<i64: 32, 1>}, {transform_indices = @transform_2, window_bounds = array<i64: 16, 256>}, {transform_indices = @transform_3, window_bounds = array<i64: 32, 256>}]} {
    %c0 = arith.constant 0 : index
    %c0_0 = arith.constant 0 : index
    %0 = vector.load %arg1[%c0, %c0_0] : memref<32x16xf32, #tpu.memory_space<vmem>>, vector<32x16xf32>
    %c0_1 = arith.constant 0 : index
    %c0_2 = arith.constant 0 : index
    %1 = vector.load %arg3[%c0_1, %c0_2] : memref<16x256xf32, #tpu.memory_space<vmem>>, vector<16x256xf32>
    %cst = arith.constant dense<0.000000e+00> : vector<32x256xf32>
    %2 = tpu.matmul %0, %1, %cst {dimension_numbers = #tpu.dot_dimension_numbers<[1], [0], [0], [1], [0, 0, 1, 1], [], []>} : vector<32x16xf32>, vector<16x256xf32>, vector<32x256xf32> -> vector<32x256xf32>
    %c0_3 = arith.constant 0 : index
    %c0_4 = arith.constant 0 : index
    %3 = vector.load %arg2[%c0_3, %c0_4] : memref<32x1xf32, #tpu.memory_space<vmem>>, vector<32x1xf32>
    %4 = vector.broadcast %3 : vector<32x1xf32> to vector<32x256xf32>
    %5 = arith.addf %2, %4 : vector<32x256xf32>
    %c0_5 = arith.constant 0 : index
    %c0_6 = arith.constant 0 : index
    %6 = vector.load %arg4[%c0_5, %c0_6] : memref<32x256xf32, #tpu.memory_space<vmem>>, vector<32x256xf32>
    tpu.vector_store %arg4[%c0_5, %c0_6], %5 {strides = array<i32>} : memref<32x256xf32, #tpu.memory_space<vmem>>, vector<32x256xf32>,
    return
  }
  func.func @transform_0(%arg0: i32) -> (i32, i32) {
    %c0_i32 = arith.constant 0 : i32
    %c0_i32_0 = arith.constant 0 : i32
    %c0_i32_1 = arith.constant 0 : i32
    return %c0_i32, %c0_i32_0 : i32, i32
  }
  func.func @transform_1(%arg0: i32) -> (i32, i32) {
    %c0_i32 = arith.constant 0 : i32
    %c0_i32_0 = arith.constant 0 : i32
    %c0_i32_1 = arith.constant 0 : i32
    return %c0_i32, %c0_i32_0 : i32, i32
  }
  func.func @transform_2(%arg0: i32) -> (i32, i32) {
    %c0_i32 = arith.constant 0 : i32
    %c0_i32_0 = arith.constant 0 : i32
    return %c0_i32, %arg0 : i32, i32
  }
  func.func @transform_3(%arg0: i32) -> (i32, i32) {
    %c0_i32 = arith.constant 0 : i32
    %c0_i32_0 = arith.constant 0 : i32
    return %c0_i32, %arg0 : i32, i32
  }
}

</mosaic_0001>

<bundles_post_ra>
// kernel: tpu_custom_call.1
= control target key start
LH: loop header
LB: loop body
LE: loop exit
PB: predicated region body
PF: predicated region fallthrough
CT: control target
= control target key end

     0   :  { %8 = vsyncpa [#allocation4], 0  ;;  %s686_s0 = inlined_call_operand.vmem [shape: f32[32,16], index: 0, kind: input, shape index: {}]   ;;  %s687_s1 = inlined_call_operand.vmem [shape: f32[32,1], index: 1, kind: input, shape index: {}]   ;;  %s688_s2 = inlined_call_operand.vmem [shape: f32[16,512], index: 2, kind: input, shape index: {}]   ;;  %s689_s3 = inlined_call_operand.hbm [shape: f32[32,512], index: 3, kind: output, shape index: {}]  }
   0x1   :  { %10 = vsyncpa [#allocation4 + $0x1], 0  ;;  %s553_s12 = smov 0   ;;  %s555_s13 = smov 0  }
   0x2   :  { %s557_s14 = smov 0   ;;  %s559_s15 = smov 0  }
   0x3 LB: > { %s391_s16 = sadd.s32 4294967295, %s527_s15   ;;  %s392_s17 = sadd.s32 4294967294, %s527_s15   ;;  %s527_s15 = sphi %s559_s15, %s695_s15   ;;  %s523_s14 = sphi %s557_s14, %s694_s14   ;;  %s519_s13 = sphi %s555_s13, %s693_s13   ;;  %s515_s12 = sphi %s553_s12, %s692_s12  }
   0x4   : > { %s576_s18 = sadd.s32 1, %s527_s15   ;;  %s65_s19 = sadd.s32 1, %s523_s14 }
   0x5   : > { %s62_s20 = ssub.s32 %s527_s15, %s576_s18  ;;  %p72_p0 = scmp.ne.s32.totalorder %s523_s14, %s519_s13 }
   0x6   : > { %p63_p1 = scmp.eq.s32.totalorder %s62_s20, 0  ;;  %p73_p2 = scmp.eq.s32.totalorder %s527_s15, 0 }
   0x7   : > { %p102_p3 = scmp.eq.s32.totalorder %s391_s16, 1  ;;  %p107_p4 = scmp.ne.s32.totalorder %s519_s13, %s515_s12 }
   0x8   : > { %s589_s21 = scalar_select %p63_p1, %s523_s14, %s65_s19  }
   0x9   : > { %p74_p5 = por %p73_p2, %p72_p0  ;;  %p591_p6 = por %p102_p3, %p72_p0 }
   0xa   : > { %p108_p7 = scmp.eq.s32.totalorder %s392_s17, 1  ;;  %p394_p9 = scmp.ge.s32.totalorder %s527_s15, 2 }
   0xc   : > { %p595_p8 = por %p108_p7, %p107_p4  ;;  %130 = sbr.rel (%p394_p9) target bundleno = 25 (0x19), region = 24 }
  0x11   : > { %133 = sbr.rel (!%p74_p5) target bundleno = 25 (0x19), region = 28  ;;  %s135_s24 = sand.u32 (%p74_p5), 1, %s523_s14  }
  0x12   : > { %s414_s25 = sshll.u32 (%p74_p5), %s527_s15, 4  ;;  %s395_s26 = sshll.u32 (%p74_p5), %s135_s24, 5 }
  0x13   : > { %s140_s29 = scalar_lea.vmem (%p74_p5), %s688_s2, %s414_s25  ;;  %s137_s30 = scalar_lea.vmem (%p74_p5), [#allocation2], %s395_s26 }
  0x14   : > { %v153_v0 = vld [vmem:[%s140_s29] sm:$0xff] (%p74_p5)  ;;  %v155_v1 = vld [vmem:[%s140_s29 + $0x8] sm:$0xff] (%p74_p5) }
  0x15   : > { %v157_v2 = vld [vmem:[%s140_s29 + $0x20] sm:$0xff] (%p74_p5)  ;;  %154 = vst [vmem:[%s137_s30] sm:$0xff] (%p74_p5), %v153_v0  ;;  %v159_v3 = vld [vmem:[%s140_s29 + $0x28] sm:$0xff] (%p74_p5) }
  0x16   : > { %156 = vst [vmem:[%s137_s30 + $0x8] sm:$0xff] %v155_v1 }
  0x17   : > { %158 = vst [vmem:[%s137_s30 + $0x10] sm:$0xff] %v157_v2 }
  0x18   : > { %160 = vst [vmem:[%s137_s30 + $0x18] sm:$0xff] %v159_v3 }
  0x19 PF: > { %p398_p10 = scmp.ge.s32.totalorder %s527_s15, 1  ;;  %p165_p11 = scmp.lt.s32.totalorder %s527_s15, 3 }
  0x1b   : > { %p166_p12 = pnand %p398_p10, %p165_p11 }
  0x1c   : > { %s610_s4 = sand.u32 (!%p166_p12), 1, %s519_s13   ;;  %s415_s8 = sshll.u32 (!%p166_p12), %s391_s16, 4 }
  0x1d   : > { %169 = sbr.rel (%p166_p12) target bundleno = 189 (0xbd), region = 51  ;;  %s399_s5 = sshll.u32 (!%p166_p12), %s610_s4, 5 }
  0x1e   : > { %s174_s10 = scalar_lea.vmem (!%p166_p12), [#allocation2], %s399_s5  ;;  %s400_s6 = sshll.u32 (!%p166_p12), %s610_s4, 6 }
  0x1f   : > { %s194_s7 = scalar_lea.vmem (!%p166_p12), [#allocation3], %s400_s6  ;;  %s320_s11 = scalar_lea.hbm (!%p166_p12), %s689_s3, %s415_s8 }
  0x20   : > { %s321_s17 = sshll.u32 (!%p166_p12), %s194_s7, 4  ;;  %s651_s16 = sshll.u32 (!%p166_p12), %s320_s11, 4  ;;  %s653_s17 = int_to_ptr.vmem [resolvable:$true] %s321_s17  ;;  %s324_s16 = int_to_ptr.hbm [resolvable:$true] %s651_s16 }
  0x21   : > { %s309_s19 = scalar_lea.sflag (!%p166_p12), [#allocation4], %s610_s4  ;;  %s479_s20 = sshra.s32 (!%p166_p12), %s324_s16, 4  ;;  %s480_s20 = int_to_ptr.hbm [resolvable:$true] %s479_s20 }
  0x22   : > { %v529_v4 = vmov 0   ;;  %v207_v5 = vld [vmem:[%s687_s1 + $0x10] sm:$0xff]  ;;  %v205_v6 = vld [vmem:[%s687_s1] sm:$0xff]  ;;  %v204_v8 = vld [vmem:[%s174_s10 + $0x18] sm:$0xff]  ;;  %vm229_vm0 = vcmask 130048   ;;  %s481_s24 = scalar_lea.hbm %s480_s20, 64  ;;  %p486_p2 = scmp.lt.s32.totalorder %s480_s20, %s689_s3 }
  0x23   : > { %464 = vset.pattern.permute.xlu1 %v529_v4  ;;  %463 = vset.pattern.permute.xlu0 %v529_v4  ;;  %v203_v7 = vld [vmem:[%s174_s10 + $0x10] sm:$0xff]  ;;  %v201_v9 = vld [vmem:[%s174_s10] sm:$0xff]  ;;  %v202_v10 = vld [vmem:[%s174_s10 + $0x8] sm:$0xff]  ;;  %p482_p13 = scmp.ne.s32.totalorder %s480_s20, %s481_s24  ;;  %s485_s27 = scalar_lea.hbm %s689_s3, 128 }
  0x24   : > { %221 = vperm.xlu1 %464, %v207_v5   ;;  %211 = vperm.xlu0 %463, %v205_v6   ;;  %v197_v11 = vld [vmem:[%s686_s0] sm:$0xff]  ;;  %v199_v12 = vld [vmem:[%s686_s0 + $0x10] sm:$0xff]  ;;  %v208_v13 = vld [vmem:[%s687_s1 + $0x18] sm:$0xff]  ;;  %p487_p3 = scmp.lt.s32.totalorder %s485_s27, %s481_s24 }
  0x25   : > { %256 = vmatpush.msra.mxu0 %v203_v7  ;;  %416 = vmatpush.msra.mxu2 %v203_v7  ;;  %v206_v14 = vld [vmem:[%s687_s1 + $0x8] sm:$0xff]  ;;  %v200_v16 = vld [vmem:[%s686_s0 + $0x18] sm:$0xff]  ;;  %p483_p0 = pnand %p482_p13, %p591_p6 }
  0x26   : > { %285 = vmatpush.msra.mxu1 %v204_v8  ;;  %418 = vmatpush.msra.mxu3 %v204_v8  ;;  %v198_v15 = vld [vmem:[%s686_s0 + $0x8] sm:$0xff]  ;;  %p488_p4 = por %p487_p3, %p486_p2 }
  0x27   : > { %257 = vmatpush.msra.mxu0 %v201_v9  ;;  %417 = vmatpush.msra.mxu2 %v201_v9  ;;  %p484_p1 = pneg %p483_p0 }
  0x28   : > { %286 = vmatpush.msra.mxu1 %v202_v10  ;;  %419 = vmatpush.msra.mxu3 %v202_v10 }
  0x29   : > { %401 = vmatmul.msk.f32.vlgmr.msra.gmra.mxu0 %vm229_vm0, %v197_v11  ;;  %403 = vmatmul.msk.f32.vlgmr.msra.gmra.mxu2 %vm229_vm0, %v199_v12  ;;  %p489_p5 = pnand %p488_p4, %p484_p1 }
  0x2a   : > { %405 = vmatmul.msk.f32.vlgmr.msra.gmra.mxu1 %vm229_vm0, %v197_v11  ;;  %407 = vmatmul.msk.f32.vlgmr.msra.gmra.mxu3 %vm229_vm0, %v199_v12 }
  0x2c   : > { %226 = vperm.xlu1 %464, %v208_v13   ;;  %216 = vperm.xlu0 %463, %v206_v14  }
  0x31   : > { %402 = vmatmul.msk.f32.gmra.mxu0 %vm229_vm0, %v198_v15  ;;  %404 = vmatmul.msk.f32.gmra.mxu2 %vm229_vm0, %v200_v16 }
  0x32   : > { %406 = vmatmul.msk.f32.gmra.mxu1 %vm229_vm0, %v198_v15  ;;  %408 = vmatmul.msk.f32.gmra.mxu3 %vm229_vm0, %v200_v16 }
  0x96   : > { %v212_v17 = vpop.permute.xlu0 %211  ;;  %v222_v22 = vpop.permute.xlu1 %221 }
  0x9e   : > { %v217_v26 = vpop.permute.xlu0 %216  ;;  %v227_v32 = vpop.permute.xlu1 %226 }
  0xa6   : > { %v259_v18 = vpop.f32.mrf.mxu0 }
  0xa7   : > { %v260_v19 = vadd.f32 %v259_v18, %v212_v17  ;;  %v288_v20 = vpop.f32.mrf.mxu1 }
  0xa8   : > { %v289_v21 = vadd.f32 %v288_v20, %v212_v17 }
  0xa9   : > { %300 = vst [vmem:[%s194_s7] sm:$0xff] %v260_v19 }
  0xaa   : > { %301 = vst [vmem:[%s194_s7 + $0x8] sm:$0xff] %v289_v21 }
  0xac   : > { %v265_v23 = vpop.f32.mrf.mxu2 }
  0xad   : > { %v266_v24 = vadd.f32 %v265_v23, %v222_v22  ;;  %v294_v25 = vpop.f32.mrf.mxu3 }
  0xae   : > { %v295_v27 = vadd.f32 %v294_v25, %v222_v22  ;;  %v262_v28 = vpop.f32.mrf.mxu0 }
  0xaf   : > { %304 = vst [vmem:[%s194_s7 + $0x20] sm:$0xff] %v266_v24  ;;  %v263_v29 = vadd.f32 %v262_v28, %v217_v26  ;;  %v291_v30 = vpop.f32.mrf.mxu1 }
  0xb0   : > { %305 = vst [vmem:[%s194_s7 + $0x28] sm:$0xff] %v295_v27  ;;  %v292_v31 = vadd.f32 %v291_v30, %v217_v26 }
  0xb1   : > { %302 = vst [vmem:[%s194_s7 + $0x10] sm:$0xff] %v263_v29 }
  0xb2   : > { %303 = vst [vmem:[%s194_s7 + $0x18] sm:$0xff] %v292_v31 }
  0xb4   : > { %v268_v33 = vpop.f32.mrf.mxu2 }
  0xb5   : > { %v269_v34 = vadd.f32 %v268_v33, %v227_v32  ;;  %v297_v35 = vpop.f32.mrf.mxu3 }
  0xb6   : > { %v298_v36 = vadd.f32 %v297_v35, %v227_v32 }
  0xb7   : > { %306 = vst [vmem:[%s194_s7 + $0x30] sm:$0xff] %v269_v34 }
  0xb8   : > { %307 = vst [vmem:[%s194_s7 + $0x38] sm:$0xff] %v298_v36 }
  0xb9   : > { %492 = shalt.err (!%p489_p5)
}
  0xba   : > { %s530_s4 = smov 256   ;;  %s531_s30 = smov 512  }
  0xbb   : > { %s532_s5 = smov 16  }
  0xbc   : > { %420 = dma.vmem_to_hbm [thread:$0]  (%p591_p6), %s653_s17, 1024, %s324_s16, %s309_s19, %s530_s4, %s531_s30, %s532_s5  }
  0xbd PF: > { %s338_s6 = sand.u32 1, %s515_s12   ;;  %p423_p7 = pnand %p394_p9, %p595_p8 }
  0xbe   : > { %s339_s7 = scalar_lea.sflag [#allocation4], %s338_s6 }
  0xbf   : > { %p424_p10 = pneg %p423_p7 }
  0xc1   : > { %510 = dma.done.wait (%p424_p10), %s339_s7, 1024  }
  0xc2   : > { %512 = vsyncadd (%p424_p10), %s339_s7, 4294966272  ;;  %p13_p11 = scmp.ge.s32.totalorder %s576_s18, 4   ;;  %s692_s12 = smov %s519_s13 }
  0xc3   : > { %s693_s13 = smov %s523_s14  ;;  %s694_s14 = smov %s589_s21 }
  0xc4   : > { %s695_s15 = smov %s576_s18  ;;  %15 = sbr.rel (!%p13_p11) target bundleno = 3 (0x3), region = 95 }
  0xc9   :  { %345 = vsyncpa [#allocation4], 1 }
  0xca   :  { %347 = vsyncpa [#allocation4 + $0x1], 1 }

</bundles_post_ra>
